<compile_context>
chip_gen: v6e
topology: v6e:2x2x1
jax: 0.10.0
libtpu: 0.0.40
codegen_flags: <defaults>
</compile_context>

<pallas_src>
import math
from functools import partial

import jax
import jax.numpy as jnp
from jax.experimental import pallas as pl
from jax.experimental.pallas import tpu as pltpu

LANE = 128          # lane width
_TK_MAX = 2048      # max contraction tile
_ROW_TILE_MAX = 2048

_VMEM_CAP = None


def _round_up(v, m):
    return (v + m - 1) // m * m


def _pad2(a, rows, cols, dtype):
    """Zero-pad a 2-D array to (rows, cols) and cast to dtype."""
    out = jnp.zeros((rows, cols), dtype)
    return out.at[: a.shape[0], : a.shape[1]].set(a.astype(dtype))


def _vmem_capacity_bytes():
    global _VMEM_CAP
    if _VMEM_CAP is None:
        cap = None
        try:
            cap = getattr(pltpu.get_tpu_info(), "vmem_capacity_bytes", None)
            cap = int(cap) if cap else None
        except Exception:
            cap = None
        # Conservative default = v7x per-TensorCore VMEM.
        _VMEM_CAP = cap if cap else (64 << 20)
    return _VMEM_CAP


def _choose_tiles(n, chwp, dp, hp, kp, x_bytes, emit_feats):
    """Pick (tile_n, tk, vmem_limit_bytes) from a per-generation VMEM budget."""
    cap = _vmem_capacity_bytes()
    budget = int(cap * 0.6)  # headroom for Mosaic internals / pipelining

    # Contraction tile: largest multiple of 128 that divides chwp and is
    # <= _TK_MAX, so the reduction grid axis has no ragged edge.
    q = chwp // LANE
    tk_units = 1
    for u in range(min(q, _TK_MAX // LANE), 0, -1):
        if q % u == 0:
            tk_units = u
            break
    tk = tk_units * LANE

    out_cols = kp if kp else dp
    # Weight footprint (assume double-buffered; w_exp blocks vary with k,
    # the head weights are grid-invariant and small).
    wt = 2 * tk * dp * 2 + 2 * dp * 4
    if hp:
        wt += 2 * (dp * hp + hp * kp) * 2 + 2 * (hp + kp) * 4
    # Per-row cost: x tile (double-buffered), f32 accumulator, output blocks.
    per_row = 2 * tk * x_bytes + dp * 4 + 2 * out_cols * 4
    if emit_feats:
        per_row += 2 * dp * 2  # bf16 aux feature output

    rows_fit = max(8, (budget - wt) // max(per_row, 1))

    if n <= 8:
        tile_n = n  # full-dim row block (no row tiling needed)
    else:
        # >= 2 row tiles when the batch permits, so the "parallel" axis can
        # shard across both TensorCores on v7x (harmless on v5e/v6e).
        half = _round_up(pl.cdiv(n, 2), 8)
        tile_n = max(8, min(half, (rows_fit // 8) * 8, _ROW_TILE_MAX))

    need = wt + tile_n * per_row
    vmem_limit = int(min(cap * 0.9, max(need * 2, 16 << 20)))
    return tile_n, tk, vmem_limit


# ----------------------------------------------------------------------------
# In-kernel math
# ----------------------------------------------------------------------------

def _erf(x):
    # Abramowitz & Stegun 7.1.26 polynomial (|err| <= 1.5e-7).  Keeps the head
    # GELU at torch.nn.GELU's exact-erf behavior without relying on a native
    # erf lowering; uses only exp / mul / add / where (EUP + VPU).
    a1, a2, a3, a4, a5 = (0.254829592, -0.284496736, 1.421413741,
                          -1.453152027, 1.061405429)
    p = 0.3275911
    ax = jnp.abs(x)
    t = 1.0 / (1.0 + p * ax)
    poly = ((((a5 * t + a4) * t + a3) * t + a2) * t + a1) * t
    y = 1.0 - poly * jnp.exp(-(ax * ax))
    return jnp.where(x < 0.0, -y, y)


def _gelu_exact(x):
    return 0.5 * x * (1.0 + _erf(x * (1.0 / math.sqrt(2.0))))


def _head(feats, w1_ref, b1_ref, w2_ref, b2_ref):
    h = jnp.dot(feats.astype(jnp.bfloat16), w1_ref[...],
                preferred_element_type=jnp.float32) + b1_ref[...]
    h = _gelu_exact(h)
    return jnp.dot(h.astype(jnp.bfloat16), w2_ref[...],
                   preferred_element_type=jnp.float32) + b2_ref[...]


def _accumulate(x_ref, wexp_ref, acc_ref):
    # Mean-pool is pre-folded into wexp; bf16 cast happens here (in-kernel),
    # so the kernel reads x straight from HBM in its original dtype.
    acc_ref[...] += jnp.dot(x_ref[...].astype(jnp.bfloat16), wexp_ref[...],
                            preferred_element_type=jnp.float32)


# ----------------------------------------------------------------------------
# Kernels (grid = (row_tiles, k_tiles); k is the reduction axis, placed last)
# ----------------------------------------------------------------------------

def _backbone_kernel(x_ref, wexp_ref, bb_ref, feat_ref, acc_ref):
    k = pl.program_id(1)

    @pl.when(k == 0)
    def _():
        acc_ref[...] = jnp.zeros_like(acc_ref)

    _accumulate(x_ref, wexp_ref, acc_ref)

    @pl.when(k == pl.num_programs(1) - 1)
    def _():
        feat_ref[...] = (acc_ref[...] + bb_ref[...]).astype(feat_ref.dtype)


def _fused_kernel_out(x_ref, wexp_ref, bb_ref, w1_ref, b1_ref, w2_ref, b2_ref,
                      out_ref, acc_ref):
    k = pl.program_id(1)

    @pl.when(k == 0)
    def _():
        acc_ref[...] = jnp.zeros_like(acc_ref)

    _accumulate(x_ref, wexp_ref, acc_ref)

    @pl.when(k == pl.num_programs(1) - 1)
    def _():
        feats = acc_ref[...] + bb_ref[...]
        out_ref[...] = _head(feats, w1_ref, b1_ref, w2_ref, b2_ref)


def _fused_kernel_feats_out(x_ref, wexp_ref, bb_ref, w1_ref, b1_ref, w2_ref,
                            b2_ref, feat_ref, out_ref, acc_ref):
    k = pl.program_id(1)

    @pl.when(k == 0)
    def _():
        acc_ref[...] = jnp.zeros_like(acc_ref)

    _accumulate(x_ref, wexp_ref, acc_ref)

    @pl.when(k == pl.num_programs(1) - 1)
    def _():
        feats = acc_ref[...] + bb_ref[...]
        feat_ref[...] = feats.astype(feat_ref.dtype)   # bf16 aux output
        out_ref[...] = _head(feats, w1_ref, b1_ref, w2_ref, b2_ref)


# ----------------------------------------------------------------------------
# Per-crop forward (single fused pallas_call: backbone [+ head]), jitted.
# ----------------------------------------------------------------------------

@partial(jax.jit, static_argnames=("d", "k_out", "emit_feats"))
def _crop_forward(x_nchw, w_exp, bb, head, *, d, k_out, emit_feats):
    n = x_nchw.shape[0]
    chw = 1
    for s in x_nchw.shape[1:]:
        chw *= int(s)
    chwp, dp = w_exp.shape

    x2 = x_nchw.reshape(n, chw)  # contiguous reshape; no copy under jit
    if chwp != chw:
        # Lane-align the contraction dim (only when C*H*W is not a multiple
        # of 128); the matching w_exp rows are zero so padding contributes 0.
        x2 = jnp.zeros((n, chwp), x2.dtype).at[:, :chw].set(x2)

    x_bytes = jnp.dtype(x2.dtype).itemsize
    if head is None:
        hp = kp = 0
    else:
        hp = head[0].shape[1]
        kp = head[2].shape[1]

    tile_n, tk, vmem_limit = _choose_tiles(
        n, chwp, dp, hp, kp, x_bytes, emit_feats and head is not None)
    grid = (pl.cdiv(n, tile_n), chwp // tk)

    x_spec = pl.BlockSpec((tile_n, tk), lambda i, k: (i, k))
    wexp_spec = pl.BlockSpec((tk, dp), lambda i, k: (k, 0))

    def rep(shape):  # grid-invariant (small) operands
        return pl.BlockSpec(shape, lambda i, k: (0, 0))

    def row_out(width):
        return pl.BlockSpec((tile_n, width), lambda i, k: (i, 0))

    cparams = pltpu.CompilerParams(
        dimension_semantics=("parallel", "arbitrary"),
        vmem_limit_bytes=vmem_limit,
    )
    scratch = [pltpu.VMEM((tile_n, dp), jnp.float32)]

    if head is None:
        feats = pl.pallas_call(
            _backbone_kernel,
            out_shape=jax.ShapeDtypeStruct((n, dp), jnp.float32),
            grid_spec=pltpu.PrefetchScalarGridSpec(
                num_scalar_prefetch=0, grid=grid,
                in_specs=[x_spec, wexp_spec, rep((1, dp))],
                out_specs=row_out(dp),
                scratch_shapes=scratch),
            compiler_params=cparams,
        )(x2, w_exp, bb)
        feats = feats[:, :d]
        return feats, feats  # Identity head

    w1p, b1p, w2p, b2p = head
    in_specs = [x_spec, wexp_spec, rep((1, dp)),
                rep((dp, hp)), rep((1, hp)), rep((hp, kp)), rep((1, kp))]

    if emit_feats:
        feats, out = pl.pallas_call(
            _fused_kernel_feats_out,
            out_shape=(jax.ShapeDtypeStruct((n, dp), jnp.bfloat16),
                       jax.ShapeDtypeStruct((n, kp), jnp.float32)),
            grid_spec=pltpu.PrefetchScalarGridSpec(
                num_scalar_prefetch=0, grid=grid,
                in_specs=in_specs,
                out_specs=(row_out(dp), row_out(kp)),
                scratch_shapes=scratch),
            compiler_params=cparams,
        )(x2, w_exp, bb, w1p, b1p, w2p, b2p)
        return feats[:, :d], out[:, :k_out]

    out = pl.pallas_call(
        _fused_kernel_out,
        out_shape=jax.ShapeDtypeStruct((n, kp), jnp.float32),
        grid_spec=pltpu.PrefetchScalarGridSpec(
            num_scalar_prefetch=0, grid=grid,
            in_specs=in_specs,
            out_specs=row_out(kp),
            scratch_shapes=scratch),
        compiler_params=cparams,
    )(x2, w_exp, bb, w1p, b1p, w2p, b2p)
    return None, out[:, :k_out]


# ----------------------------------------------------------------------------
# MultiCropWrapper (forward-pass semantics of the PyTorch module)
# ----------------------------------------------------------------------------

class MultiCropWrapper:
    def __init__(self, backbone_params, head_params=None):
        # backbone.fc / backbone.head are Identity in the original module;
        # the synthetic backbone already ends at its features.
        w_b, b_b = backbone_params
        self._w_b = jnp.asarray(w_b, jnp.float32)
        self._d = int(self._w_b.shape[1])
        self._dp = _round_up(self._d, LANE)
        self._bb = _pad2(jnp.asarray(b_b).reshape(1, -1), 1, self._dp,
                         jnp.float32)
        if head_params is None:
            self._head = None
            self._k_out = None
        else:
            w1, b1, w2, b2 = head_params
            hp = _round_up(int(w1.shape[1]), LANE)
            kp = _round_up(int(w2.shape[1]), LANE)
            self._k_out = int(w2.shape[1])
            # Zero-padded lanes stay exactly zero through the whole head
            # (gelu(0) == 0), so nothing leaks into valid columns.
            self._head = (
                _pad2(jnp.asarray(w1), self._dp, hp, jnp.bfloat16),
                _pad2(jnp.asarray(b1).reshape(1, -1), 1, hp, jnp.float32),
                _pad2(jnp.asarray(w2), hp, kp, jnp.bfloat16),
                _pad2(jnp.asarray(b2).reshape(1, -1), 1, kp, jnp.float32),
            )
        self._wexp_cache = {}  # (C, H*W) -> pool-folded, padded bf16 weight

    def _wexp(self, c, hw):
        key = (int(c), int(hw))
        if key not in self._wexp_cache:
            chwp = _round_up(key[0] * key[1], LANE)
            # Fold the average pool into the contraction weight:
            #   mean_hw(x) @ W == x.reshape(N, C*HW) @ repeat(W / HW, HW, 0)
            w_exp = jnp.repeat(self._w_b / key[1], key[1], axis=0)
            self._wexp_cache[key] = _pad2(w_exp, chwp, self._dp, jnp.bfloat16)
        return self._wexp_cache[key]

    def __call__(self, x, mask=None, return_backbone_feat=False, **kwargs):
        if not isinstance(x, list):
            x = [x]
            mask = [mask] if mask is not None else None
        # TODO(synk): the synthetic backbone takes no mask; the original
        # module concatenates mask[start:end] and forwards it to the backbone.

        # The original clubs consecutive same-resolution crops before the
        # backbone and runs the head on the concatenated features.  Both the
        # backbone and the head here are purely row-wise, so running the fused
        # kernel once per crop and concatenating only the tiny (N,D)/(N,K)
        # outputs is mathematically identical while avoiding the full HBM
        # read+write of every crop's pixels that the group concat would cost.
        need_feats = return_backbone_feat or (self._head is None)

        feats_parts, out_parts = [], []
        for xi in x:
            c = int(xi.shape[1])
            hw = int(xi.shape[2]) * int(xi.shape[3])
            f, o = _crop_forward(xi, self._wexp(c, hw), self._bb, self._head,
                                 d=self._d, k_out=self._k_out,
                                 emit_feats=need_feats)
            if need_feats:
                feats_parts.append(f)
            out_parts.append(o)

        def _cat(parts):
            return parts[0] if len(parts) == 1 else jnp.concatenate(parts, 0)

        output_ = _cat(out_parts)
        if return_backbone_feat:
            return _cat(feats_parts), output_
        return output_


# ----------------------------------------------------------------------------
# Demo
# ----------------------------------------------------------------------------

if __name__ == "__main__":
    key = jax.random.PRNGKey(0)
    (k_x1, k_x2, k_x3, k_x4, k_wb, k_bb,
     k_w1, k_b1, k_w2, k_b2) = jax.random.split(key, 10)

    B, C = 2, 4           # batch per crop, channels
    D, H, K = 32, 32, 16  # backbone feat dim, head hidden, head out

    # Two "global" crops at 16x16 and two "local" crops at 8x8 (NCHW layout).
    x = [
        jax.random.normal(k_x1, (B, C, 16, 16), dtype=jnp.float32),
        jax.random.normal(k_x2, (B, C, 16, 16), dtype=jnp.float32),
        jax.random.normal(k_x3, (B, C, 8, 8), dtype=jnp.float32),
        jax.random.normal(k_x4, (B, C, 8, 8), dtype=jnp.float32),
    ]

    w_b = jax.random.normal(k_wb, (C, D), dtype=jnp.float32) / math.sqrt(C)
    b_b = 0.1 * jax.random.normal(k_bb, (1, D), dtype=jnp.float32)
    w1 = jax.random.normal(k_w1, (D, H), dtype=jnp.float32) / math.sqrt(D)
    b1 = 0.1 * jax.random.normal(k_b1, (1, H), dtype=jnp.float32)
    w2 = jax.random.normal(k_w2, (H, K), dtype=jnp.float32) / math.sqrt(H)
    b2 = 0.1 * jax.random.normal(k_b2, (1, K), dtype=jnp.float32)

    model = MultiCropWrapper(
        backbone_params=(w_b, b_b),
        head_params=(w1, b1, w2, b2),
    )

    feats, out = model(x, return_backbone_feat=True)
    feats = jax.block_until_ready(feats)
    out = jax.block_until_ready(out)

    # Also exercise the head-only fused kernel (no feature emission).
    out_only = jax.block_until_ready(model(x))

    # Plain-JAX f32 reference (bf16 MXU operands in-kernel -> loose tolerance).
    def ref_backbone(xi):
        return xi.mean(axis=(2, 3)) @ w_b + b_b

    ref_feats = jnp.concatenate(
        [ref_backbone(jnp.concatenate(x[0:2], axis=0)),
         ref_backbone(jnp.concatenate(x[2:4], axis=0))], axis=0)
    ref_out = jax.nn.gelu(ref_feats @ w1 + b1, approximate=False) @ w2 + b2

    assert feats.shape == (4 * B, D)
    assert out.shape == (4 * B, K)
    assert out_only.shape == (4 * B, K)
    assert jnp.allclose(feats.astype(jnp.float32), ref_feats,
                        atol=1e-2, rtol=1e-2)
    assert jnp.allclose(out, ref_out, atol=1e-2, rtol=1e-2)
    assert jnp.allclose(out_only, out, atol=1e-5, rtol=1e-5)

    print("KERNEL_OK")
</pallas_src>

<mosaic_0001>
module attributes {stable_mosaic.version = 11 : i64} {
  func.func @_fused_kernel_feats_out(%arg0: i32, %arg1: i32, %arg2: memref<2x1024xf32, #tpu.memory_space<vmem>>, %arg3: memref<1024x128xbf16, #tpu.memory_space<vmem>>, %arg4: memref<1x128xf32, #tpu.memory_space<vmem>>, %arg5: memref<128x128xbf16, #tpu.memory_space<vmem>>, %arg6: memref<1x128xf32, #tpu.memory_space<vmem>>, %arg7: memref<128x128xbf16, #tpu.memory_space<vmem>>, %arg8: memref<1x128xf32, #tpu.memory_space<vmem>>, %arg9: memref<2x128xbf16, #tpu.memory_space<vmem>>, %arg10: memref<2x128xf32, #tpu.memory_space<vmem>>, %arg11: memref<2x128xf32, #tpu.memory_space<vmem>>) attributes {dimension_semantics = [#tpu.dimension_semantics<parallel>, #tpu.dimension_semantics<arbitrary>], iteration_bounds = array<i64: 1, 1>, scalar_prefetch = 0 : i64, scratch_operands = 1 : i64, tpu.core_type = #tpu.core_type<tc>, window_params = [{transform_indices = @transform_0, window_bounds = array<i64: 2, 1024>}, {transform_indices = @transform_1, window_bounds = array<i64: 1024, 128>}, {pipeline_mode = #tpu.pipeline_mode<synchronous>, transform_indices = @transform_2, window_bounds = array<i64: 1, 128>}, {pipeline_mode = #tpu.pipeline_mode<synchronous>, transform_indices = @transform_3, window_bounds = array<i64: 128, 128>}, {pipeline_mode = #tpu.pipeline_mode<synchronous>, transform_indices = @transform_4, window_bounds = array<i64: 1, 128>}, {pipeline_mode = #tpu.pipeline_mode<synchronous>, transform_indices = @transform_5, window_bounds = array<i64: 128, 128>}, {pipeline_mode = #tpu.pipeline_mode<synchronous>, transform_indices = @transform_6, window_bounds = array<i64: 1, 128>}, {transform_indices = @transform_7, window_bounds = array<i64: 2, 128>}, {transform_indices = @transform_8, window_bounds = array<i64: 2, 128>}]} {
    %c0_i32 = arith.constant 0 : i32
    %0 = arith.cmpi eq, %arg1, %c0_i32 : i32
    %1 = arith.extui %0 : i1 to i32
    %c0_i32_0 = arith.constant 0 : i32
    %2 = arith.cmpi ne, %1, %c0_i32_0 : i32
    scf.if %2 {
      %cst_10 = arith.constant 0.000000e+00 : f32
      %13 = vector.broadcast %cst_10 : f32 to vector<2x128xf32>
      %c0_11 = arith.constant 0 : index
      %c0_12 = arith.constant 0 : index
      %14 = vector.load %arg11[%c0_11, %c0_12] : memref<2x128xf32, #tpu.memory_space<vmem>>, vector<2x128xf32>
      tpu.vector_store %arg11[%c0_11, %c0_12], %13 {strides = array<i32>} : memref<2x128xf32, #tpu.memory_space<vmem>>, vector<2x128xf32>,
    } else {
    }
    %c0 = arith.constant 0 : index
    %c0_1 = arith.constant 0 : index
    %3 = vector.load %arg11[%c0, %c0_1] : memref<2x128xf32, #tpu.memory_space<vmem>>, vector<2x128xf32>
    %c0_2 = arith.constant 0 : index
    %c0_3 = arith.constant 0 : index
    %4 = vector.load %arg2[%c0_2, %c0_3] : memref<2x1024xf32, #tpu.memory_space<vmem>>, vector<2x1024xf32>
    %5 = arith.truncf %4 : vector<2x1024xf32> to vector<2x1024xbf16>
    %c0_4 = arith.constant 0 : index
    %c0_5 = arith.constant 0 : index
    %6 = vector.load %arg3[%c0_4, %c0_5] : memref<1024x128xbf16, #tpu.memory_space<vmem>>, vector<1024x128xbf16>
    %cst = arith.constant dense<0.000000e+00> : vector<2x128xf32>
    %7 = tpu.matmul %5, %6, %cst {dimension_numbers = #tpu.dot_dimension_numbers<[1], [0], [0], [1], [0, 0, 1, 1], [], []>} : vector<2x1024xbf16>, vector<1024x128xbf16>, vector<2x128xf32> -> vector<2x128xf32>
    %8 = arith.addf %3, %7 : vector<2x128xf32>
    %c0_6 = arith.constant 0 : index
    %c0_7 = arith.constant 0 : index
    %9 = vector.load %arg11[%c0_6, %c0_7] : memref<2x128xf32, #tpu.memory_space<vmem>>, vector<2x128xf32>
    tpu.vector_store %arg11[%c0_6, %c0_7], %8 {strides = array<i32>} : memref<2x128xf32, #tpu.memory_space<vmem>>, vector<2x128xf32>,
    %c0_i32_8 = arith.constant 0 : i32
    %10 = arith.cmpi eq, %arg1, %c0_i32_8 : i32
    %11 = arith.extui %10 : i1 to i32
    %c0_i32_9 = arith.constant 0 : i32
    %12 = arith.cmpi ne, %11, %c0_i32_9 : i32
    scf.if %12 {
      %c0_10 = arith.constant 0 : index
      %c0_11 = arith.constant 0 : index
      %13 = vector.load %arg11[%c0_10, %c0_11] : memref<2x128xf32, #tpu.memory_space<vmem>>, vector<2x128xf32>
      %c0_12 = arith.constant 0 : index
      %c0_13 = arith.constant 0 : index
      %14 = vector.load %arg4[%c0_12, %c0_13] : memref<1x128xf32, #tpu.memory_space<vmem>>, vector<1x128xf32>
      %15 = vector.broadcast %14 : vector<1x128xf32> to vector<2x128xf32>
      %16 = arith.addf %13, %15 : vector<2x128xf32>
      %17 = arith.truncf %16 : vector<2x128xf32> to vector<2x128xbf16>
      %c0_14 = arith.constant 0 : index
      %c0_15 = arith.constant 0 : index
      %18 = vector.load %arg9[%c0_14, %c0_15] : memref<2x128xbf16, #tpu.memory_space<vmem>>, vector<2x128xbf16>
      tpu.vector_store %arg9[%c0_14, %c0_15], %17 {strides = array<i32>} : memref<2x128xbf16, #tpu.memory_space<vmem>>, vector<2x128xbf16>,
      %19 = arith.truncf %16 : vector<2x128xf32> to vector<2x128xbf16>
      %c0_16 = arith.constant 0 : index
      %c0_17 = arith.constant 0 : index
      %20 = vector.load %arg5[%c0_16, %c0_17] : memref<128x128xbf16, #tpu.memory_space<vmem>>, vector<128x128xbf16>
      %cst_18 = arith.constant dense<0.000000e+00> : vector<2x128xf32>
      %21 = tpu.matmul %19, %20, %cst_18 {dimension_numbers = #tpu.dot_dimension_numbers<[1], [0], [0], [1], [0, 0, 1, 1], [], []>} : vector<2x128xbf16>, vector<128x128xbf16>, vector<2x128xf32> -> vector<2x128xf32>
      %c0_19 = arith.constant 0 : index
      %c0_20 = arith.constant 0 : index
      %22 = vector.load %arg6[%c0_19, %c0_20] : memref<1x128xf32, #tpu.memory_space<vmem>>, vector<1x128xf32>
      %23 = vector.broadcast %22 : vector<1x128xf32> to vector<2x128xf32>
      %24 = arith.addf %21, %23 : vector<2x128xf32>
      %cst_21 = arith.constant 5.000000e-01 : f32
      %25 = vector.broadcast %cst_21 : f32 to vector<2x128xf32>
      %26 = arith.mulf %25, %24 : vector<2x128xf32>
      %cst_22 = arith.constant 0.707106769 : f32
      %27 = vector.broadcast %cst_22 : f32 to vector<2x128xf32>
      %28 = arith.mulf %24, %27 : vector<2x128xf32>
      %29 = math.absf %28 : vector<2x128xf32>
      %cst_23 = arith.constant 0.327591091 : f32
      %30 = vector.broadcast %cst_23 : f32 to vector<2x128xf32>
      %31 = arith.mulf %30, %29 : vector<2x128xf32>
      %cst_24 = arith.constant 1.000000e+00 : f32
      %32 = vector.broadcast %cst_24 : f32 to vector<2x128xf32>
      %33 = arith.addf %32, %31 : vector<2x128xf32>
      %cst_25 = arith.constant 1.000000e+00 : f32
      %34 = vector.broadcast %cst_25 : f32 to vector<2x128xf32>
      %35 = arith.divf %34, %33 : vector<2x128xf32>
      %cst_26 = arith.constant 1.06140542 : f32
      %36 = vector.broadcast %cst_26 : f32 to vector<2x128xf32>
      %37 = arith.mulf %36, %35 : vector<2x128xf32>
      %cst_27 = arith.constant -1.45315206 : f32
      %38 = vector.broadcast %cst_27 : f32 to vector<2x128xf32>
      %39 = arith.addf %37, %38 : vector<2x128xf32>
      %40 = arith.mulf %39, %35 : vector<2x128xf32>
      %cst_28 = arith.constant 1.42141378 : f32
      %41 = vector.broadcast %cst_28 : f32 to vector<2x128xf32>
      %42 = arith.addf %40, %41 : vector<2x128xf32>
      %43 = arith.mulf %42, %35 : vector<2x128xf32>
      %cst_29 = arith.constant -0.284496725 : f32
      %44 = vector.broadcast %cst_29 : f32 to vector<2x128xf32>
      %45 = arith.addf %43, %44 : vector<2x128xf32>
      %46 = arith.mulf %45, %35 : vector<2x128xf32>
      %cst_30 = arith.constant 0.254829586 : f32
      %47 = vector.broadcast %cst_30 : f32 to vector<2x128xf32>
      %48 = arith.addf %46, %47 : vector<2x128xf32>
      %49 = arith.mulf %48, %35 : vector<2x128xf32>
      %50 = arith.mulf %29, %29 : vector<2x128xf32>
      %cst_31 = arith.constant 0.000000e+00 : f32
      %51 = vector.broadcast %cst_31 : f32 to vector<2x128xf32>
      %52 = arith.subf %51, %50 : vector<2x128xf32>
      %53 = math.exp %52 : vector<2x128xf32>
      %54 = arith.mulf %49, %53 : vector<2x128xf32>
      %cst_32 = arith.constant 1.000000e+00 : f32
      %55 = vector.broadcast %cst_32 : f32 to vector<2x128xf32>
      %56 = arith.subf %55, %54 : vector<2x128xf32>
      %cst_33 = arith.constant 0.000000e+00 : f32
      %57 = vector.broadcast %cst_33 : f32 to vector<2x128xf32>
      %58 = arith.cmpf olt, %28, %57 : vector<2x128xf32>
      %cst_34 = arith.constant 0.000000e+00 : f32
      %59 = vector.broadcast %cst_34 : f32 to vector<2x128xf32>
      %60 = arith.subf %59, %56 : vector<2x128xf32>
      %61 = arith.select %58, %60, %56 : vector<2x128xi1>, vector<2x128xf32>
      %cst_35 = arith.constant 1.000000e+00 : f32
      %62 = vector.broadcast %cst_35 : f32 to vector<2x128xf32>
      %63 = arith.addf %62, %61 : vector<2x128xf32>
      %64 = arith.mulf %26, %63 : vector<2x128xf32>
      %65 = arith.truncf %64 : vector<2x128xf32> to vector<2x128xbf16>
      %c0_36 = arith.constant 0 : index
      %c0_37 = arith.constant 0 : index
      %66 = vector.load %arg7[%c0_36, %c0_37] : memref<128x128xbf16, #tpu.memory_space<vmem>>, vector<128x128xbf16>
      %cst_38 = arith.constant dense<0.000000e+00> : vector<2x128xf32>
      %67 = tpu.matmul %65, %66, %cst_38 {dimension_numbers = #tpu.dot_dimension_numbers<[1], [0], [0], [1], [0, 0, 1, 1], [], []>} : vector<2x128xbf16>, vector<128x128xbf16>, vector<2x128xf32> -> vector<2x128xf32>
      %c0_39 = arith.constant 0 : index
      %c0_40 = arith.constant 0 : index
      %68 = vector.load %arg8[%c0_39, %c0_40] : memref<1x128xf32, #tpu.memory_space<vmem>>, vector<1x128xf32>
      %69 = vector.broadcast %68 : vector<1x128xf32> to vector<2x128xf32>
      %70 = arith.addf %67, %69 : vector<2x128xf32>
      %c0_41 = arith.constant 0 : index
      %c0_42 = arith.constant 0 : index
      %71 = vector.load %arg10[%c0_41, %c0_42] : memref<2x128xf32, #tpu.memory_space<vmem>>, vector<2x128xf32>
      tpu.vector_store %arg10[%c0_41, %c0_42], %70 {strides = array<i32>} : memref<2x128xf32, #tpu.memory_space<vmem>>, vector<2x128xf32>,
    } else {
    }
    return
  }
  func.func @transform_0(%arg0: i32, %arg1: i32) -> (i32, i32) {
    %c0_i32 = arith.constant 0 : i32
    return %arg0, %arg1 : i32, i32
  }
  func.func @transform_1(%arg0: i32, %arg1: i32) -> (i32, i32) {
    %c0_i32 = arith.constant 0 : i32
    %c0_i32_0 = arith.constant 0 : i32
    return %arg1, %c0_i32 : i32, i32
  }
  func.func @transform_2(%arg0: i32, %arg1: i32) -> (i32, i32) {
    %c0_i32 = arith.constant 0 : i32
    %c0_i32_0 = arith.constant 0 : i32
    %c0_i32_1 = arith.constant 0 : i32
    return %c0_i32, %c0_i32_0 : i32, i32
  }
  func.func @transform_3(%arg0: i32, %arg1: i32) -> (i32, i32) {
    %c0_i32 = arith.constant 0 : i32
    %c0_i32_0 = arith.constant 0 : i32
    %c0_i32_1 = arith.constant 0 : i32
    return %c0_i32, %c0_i32_0 : i32, i32
  }
  func.func @transform_4(%arg0: i32, %arg1: i32) -> (i32, i32) {
    %c0_i32 = arith.constant 0 : i32
    %c0_i32_0 = arith.constant 0 : i32
    %c0_i32_1 = arith.constant 0 : i32
    return %c0_i32, %c0_i32_0 : i32, i32
  }
  func.func @transform_5(%arg0: i32, %arg1: i32) -> (i32, i32) {
    %c0_i32 = arith.constant 0 : i32
    %c0_i32_0 = arith.constant 0 : i32
    %c0_i32_1 = arith.constant 0 : i32
    return %c0_i32, %c0_i32_0 : i32, i32
  }
  func.func @transform_6(%arg0: i32, %arg1: i32) -> (i32, i32) {
    %c0_i32 = arith.constant 0 : i32
    %c0_i32_0 = arith.constant 0 : i32
    %c0_i32_1 = arith.constant 0 : i32
    return %c0_i32, %c0_i32_0 : i32, i32
  }
  func.func @transform_7(%arg0: i32, %arg1: i32) -> (i32, i32) {
    %c0_i32 = arith.constant 0 : i32
    %c0_i32_0 = arith.constant 0 : i32
    return %arg0, %c0_i32 : i32, i32
  }
  func.func @transform_8(%arg0: i32, %arg1: i32) -> (i32, i32) {
    %c0_i32 = arith.constant 0 : i32
    %c0_i32_0 = arith.constant 0 : i32
    return %arg0, %c0_i32 : i32, i32
  }
}

</mosaic_0001>

<bundles_post_ra>
// kernel: _crop_forward.1
= control target key start
LH: loop header
LB: loop body
LE: loop exit
PB: predicated region body
PF: predicated region fallthrough
CT: control target
= control target key end

     0   :  { %14 = vsyncpa [#allocation4], 0  ;;  %s1612_s0 = inlined_call_operand.vmem [shape: f32[2,1024], index: 0, kind: input, shape index: {}]   ;;  %s1613_s1 = inlined_call_operand.hbm [shape: bf16[1024,128], index: 1, kind: input, shape index: {}]   ;;  %s1614_s2 = inlined_call_operand.vmem [shape: f32[1,128], index: 2, kind: input, shape index: {}]   ;;  %s1615_s3 = inlined_call_operand.vmem [shape: bf16[128,128], index: 3, kind: input, shape index: {}]   ;;  %s1616_s4 = inlined_call_operand.vmem [shape: f32[1,128], index: 4, kind: input, shape index: {}]   ;;  %s1617_s5 = inlined_call_operand.vmem [shape: bf16[128,128], index: 5, kind: input, shape index: {}]   ;;  %s1618_s6 = inlined_call_operand.vmem [shape: f32[1,128], index: 6, kind: input, shape index: {}]   ;;  %s1619_s7 = inlined_call_operand.hbm [shape: bf16[2,128], index: 7, kind: output, shape index: {0}]   ;;  %s1620_s8 = inlined_call_operand.hbm [shape: f32[2,128], index: 8, kind: output, shape index: {1}]  }
   0x1   :  { %15 = vsyncpa [#allocation5], 0 }
   0x2   :  { %16 = vsyncpa [#allocation8], 0  ;;  %s1462_s27 = smov [#allocation3]  }
   0x3   :  { %s24_s28 = sshll.u32 %s1462_s27, 4  ;;  %s25_s28 = int_to_ptr.vmem [resolvable:$true] %s24_s28 }
   0x4   :  { %s1404_s29 = scalar_lea.vmem %s25_s28, 8192  ;;  %p1409_p1 = scmp.lt.s32.totalorder %s25_s28, %s25_s28 }
   0x5   :  { %p1405_p0 = scmp.ne.s32.totalorder %s25_s28, %s1404_s29  ;;  %p1410_p2 = scmp.lt.s32.totalorder %s1404_s29, %s1404_s29 }
   0x7   :  { %p1411_p3 = por %p1410_p2, %p1409_p1 }
   0x9   :  { %p1412_p4 = pnand %p1411_p3, %p1405_p0 }
   0xb   :  { %1415 = shalt.err (!%p1412_p4)
}
   0xc   :  { %s1463_s30 = smov 64   ;;  %s1464_s9 = smov 4  }
   0xd   :  { %30 = dma.hbm_to_vmem [thread:$0]  %s1613_s1, 8192, %s25_s28, [#allocation4], %s1463_s30, %s1463_s30, %s1464_s9  }
   0xe   :  { %1456 = dma.done.wait [#allocation4], 8192  }
   0xf   :  { %1457 = vsyncadd [#allocation4], 4294959104  ;;  %v1310_v0 = vld [vmem:[#allocation3 + $0x78] sm:$0xff]   ;;  %v1314_v4 = vld [vmem:[#allocation3 + $0x70] sm:$0xff]   ;;  %v1465_v22 = vmov 1983009808   ;;  %v59_v24 = vlaneseq }
  0x10   :  { %v1311_v1 = vld [vmem:[#allocation3 + $0xf8] sm:$0xff]   ;;  %1156 = vmatprep.subr.bf16.mxu0 %v1310_v0  ;;  %v1315_v5 = vld [vmem:[#allocation3 + $0xf0] sm:$0xff]   ;;  %v1318_v8 = vld [vmem:[#allocation3 + $0x68] sm:$0xff]   ;;  %v57_v23 = vunpack.c.l.s4 %v1465_v22  ;;  %vm1467_vm0 = vmmov 0  }
  0x11   :  { %v1312_v2 = vld [vmem:[#allocation3 + $0x38] sm:$0xff]   ;;  %1178 = vmatprep.subr.bf16.mxu1 %v1311_v1  ;;  %v1316_v6 = vld [vmem:[#allocation3 + $0x30] sm:$0xff]   ;;  %v1319_v9 = vld [vmem:[#allocation3 + $0xe8] sm:$0xff]   ;;  %v60_v30 = vshrl.u32 %v59_v24, 7 }
  0x12   :  { %v1313_v3 = vld [vmem:[#allocation3 + $0xb8] sm:$0xff]   ;;  %1157 = vmatpush3.bf16.msra.mxu0 %v1312_v2  ;;  %v1317_v7 = vld [vmem:[#allocation3 + $0xb0] sm:$0xff]   ;;  %v1320_v10 = vld [vmem:[#allocation3 + $0x28] sm:$0xff]   ;;  %v58_v29 = vunpack.c.0.s8 %v57_v23 }
  0x13   :  { %1179 = vmatpush3.bf16.msra.mxu1 %v1313_v3  ;;  %1158 = vmatprep.subr.bf16.mxu0 %v1314_v4  ;;  %v1321_v11 = vld [vmem:[#allocation3 + $0xa8] sm:$0xff]   ;;  %v1322_v12 = vld [vmem:[#allocation3 + $0x60] sm:$0xff]   ;;  %v1326_v16 = vld [vmem:[#allocation3 + $0x58] sm:$0xff]  }
  0x14   :  { %1180 = vmatprep.subr.bf16.mxu1 %v1315_v5  ;;  %v1323_v13 = vld [vmem:[#allocation3 + $0xe0] sm:$0xff]   ;;  %v1327_v17 = vld [vmem:[#allocation3 + $0xd8] sm:$0xff]   ;;  %v1330_v20 = vld [vmem:[#allocation3 + $0x50] sm:$0xff]   ;;  %v1518_v35 = vsub.s32 %v58_v29, %v60_v30 }
  0x15   :  { %v1324_v14 = vld [vmem:[#allocation3 + $0x20] sm:$0xff]   ;;  %v1328_v18 = vld [vmem:[#allocation3 + $0x18] sm:$0xff]   ;;  %v1331_v21 = vld [vmem:[#allocation3 + $0xd0] sm:$0xff]  }
  0x16   :  { %1159 = vmatpush3.bf16.msra.mxu0 %v1316_v6  ;;  %v1325_v15 = vld [vmem:[#allocation3 + $0xa0] sm:$0xff]   ;;  %v1329_v19 = vld [vmem:[#allocation3 + $0x98] sm:$0xff]   ;;  %v1332_v25 = vld [vmem:[#allocation3 + $0x10] sm:$0xff]  }
  0x17   :  { %1181 = vmatpush3.bf16.msra.mxu1 %v1317_v7  ;;  %1160 = vmatprep.subr.bf16.mxu0 %v1318_v8  ;;  %v1333_v26 = vld [vmem:[#allocation3 + $0x90] sm:$0xff]   ;;  %v1334_v27 = vld [vmem:[#allocation3 + $0x48] sm:$0xff]   ;;  %v1338_v33 = vld [vmem:[#allocation3 + $0x40] sm:$0xff]  }
  0x18   :  { %1182 = vmatprep.subr.bf16.mxu1 %v1319_v9  ;;  %v1335_v28 = vld [vmem:[#allocation3 + $0xc8] sm:$0xff]   ;;  %v1339_v34 = vld [vmem:[#allocation3 + $0xc0] sm:$0xff]   ;;  %v1343_v41 = vld [vmem:[#allocation3 + $0x178] sm:$0xff]  }
  0x19   :  { %v1336_v31 = vld [vmem:[#allocation3 + $0x8] sm:$0xff]   ;;  %v1340_v36 = vld [vmem:[#allocation3] sm:$0xff]   ;;  %v1344_v42 = vld [vmem:[#allocation3 + $0x1f8] sm:$0xff]  }
  0x1a   :  { %1161 = vmatpush3.bf16.msra.mxu0 %v1320_v10  ;;  %v1337_v32 = vld [vmem:[#allocation3 + $0x88] sm:$0xff]   ;;  %v1341_v37 = vld [vmem:[#allocation3 + $0x80] sm:$0xff]   ;;  %v1345_v46 = vld [vmem:[#allocation3 + $0x138] sm:$0xff]  }
  0x1b   :  { %1183 = vmatpush3.bf16.msra.mxu1 %v1321_v11  ;;  %1162 = vmatprep.subr.bf16.mxu0 %v1322_v12  ;;  %v51_v38 = vld [vmem:[%s1612_s0] sm:$0xff]  ;;  %v1347_v51 = vld [vmem:[#allocation3 + $0x170] sm:$0xff]   ;;  %v1351_v56 = vld [vmem:[#allocation3 + $0x168] sm:$0xff]  }
  0x1c   :  { %1184 = vmatprep.subr.bf16.mxu1 %v1323_v13  ;;  %v62_v39 = vrot.slane %v51_v38, %v1518_v35  ;;  %v55_v40 = vcombine.high %v51_v38, %v51_v38  ;;  %v1346_v49 = vld [vmem:[#allocation3 + $0x1b8] sm:$0xff]   ;;  %v1348_v53 = vld [vmem:[#allocation3 + $0x1f0] sm:$0xff]   ;;  %v1352_v57 = vld [vmem:[#allocation3 + $0x1e8] sm:$0xff]  }
  0x1d   :  { %v1349_v54 = vld [vmem:[#allocation3 + $0x130] sm:$0xff]   ;;  %v1353_v58 = vld [vmem:[#allocation3 + $0x128] sm:$0xff]   ;;  %v1355_v60 = vld [vmem:[#allocation3 + $0x160] sm:$0xff]  }
  0x1e   :  { %1163 = vmatpush3.bf16.msra.mxu0 %v1324_v14  ;;  %v70_v43 = vcombine.high %v62_v39, %v62_v39  ;;  %v69_v44 = vrot.slane %v55_v40, %v1518_v35  ;;  %v97_v45 = vpack.c.bf16 %v62_v39, %v62_v39  ;;  %v1350_v55 = vld [vmem:[#allocation3 + $0x1b0] sm:$0xff]   ;;  %v1354_v59 = vld [vmem:[#allocation3 + $0x1a8] sm:$0xff]   ;;  %v1356_v61 = vld [vmem:[#allocation3 + $0x1e0] sm:$0xff]  }
  0x1f   :  { %1185 = vmatpush3.bf16.msra.mxu1 %v1325_v15  ;;  %1164 = vmatprep.subr.bf16.mxu0 %v1326_v16  ;;  %v1357_v62 = vld [vmem:[#allocation3 + $0x120] sm:$0xff]   ;;  %v1359_v0 = vld [vmem:[#allocation3 + $0x158] sm:$0xff]   ;;  %v1363_v4 = vld [vmem:[#allocation3 + $0x150] sm:$0xff]  }
  0x20   :  { %1186 = vmatprep.subr.bf16.mxu1 %v1327_v17  ;;  %v98_v47 = vpack.c.bf16 %v70_v43, %v70_v43  ;;  %v71_v48 = vcombine.high %v69_v44, %v69_v44  ;;  %v99_v50 = vpack.c.bf16 %v69_v44, %v69_v44  ;;  %v1358_v63 = vld [vmem:[#allocation3 + $0x1a0] sm:$0xff]   ;;  %v1360_v1 = vld [vmem:[#allocation3 + $0x1d8] sm:$0xff]   ;;  %v1364_v5 = vld [vmem:[#allocation3 + $0x1d0] sm:$0xff]  }
  0x21   :  { %v1361_v2 = vld [vmem:[#allocation3 + $0x118] sm:$0xff]   ;;  %v1365_v6 = vld [vmem:[#allocation3 + $0x110] sm:$0xff]   ;;  %v1367_v8 = vld [vmem:[#allocation3 + $0x148] sm:$0xff]  }
  0x22   :  { %1165 = vmatpush3.bf16.msra.mxu0 %v1328_v18  ;;  %649 = vmatprep.mubr.bf16.mxu0 %v98_v47  ;;  %v100_v52 = vpack.c.bf16 %v71_v48, %v71_v48  ;;  %v1362_v3 = vld [vmem:[#allocation3 + $0x198] sm:$0xff]   ;;  %v1366_v7 = vld [vmem:[#allocation3 + $0x190] sm:$0xff]   ;;  %v1368_v9 = vld [vmem:[#allocation3 + $0x1c8] sm:$0xff]  }
  0x23   :  { %1187 = vmatpush3.bf16.msra.mxu1 %v1329_v19  ;;  %1166 = vmatprep.subr.bf16.mxu0 %v1330_v20  ;;  %v1369_v10 = vld [vmem:[#allocation3 + $0x108] sm:$0xff]   ;;  %v1371_v12 = vld [vmem:[#allocation3 + $0x140] sm:$0xff]  }
  0x24   :  { %1188 = vmatprep.subr.bf16.mxu1 %v1331_v21  ;;  %689 = vmatprep.mubr.bf16.mxu1 %v100_v52  ;;  %v1370_v11 = vld [vmem:[#allocation3 + $0x188] sm:$0xff]   ;;  %v1372_v13 = vld [vmem:[#allocation3 + $0x1c0] sm:$0xff]  }
  0x25   :  { %v1373_v14 = vld [vmem:[#allocation3 + $0x100] sm:$0xff]  }
  0x26   :  { %1167 = vmatpush3.bf16.msra.mxu0 %v1332_v25  ;;  %v52_v15 = vld [vmem:[%s1612_s0 + $0x8] sm:$0xff]  ;;  %v1379_v30 = vld [vmem:[%s1615_s3 + $0x20] sm:$0xff]  }
  0x27   :  { %1189 = vmatpush3.bf16.msra.mxu1 %v1333_v26  ;;  %1168 = vmatprep.subr.bf16.mxu0 %v1334_v27  ;;  %v1374_v16 = vld [vmem:[#allocation3 + $0x180] sm:$0xff]   ;;  %v79_v17 = vrot.slane %v52_v15, %v1518_v35  ;;  %v72_v18 = vcombine.high %v52_v15, %v52_v15  ;;  %v1376_v26 = vld [vmem:[%s1615_s3 + $0x38] sm:$0xff]   ;;  %v1466_v27 = vmov 0.0  }
  0x28   :  { %1190 = vmatprep.subr.bf16.mxu1 %v1335_v28  ;;  %49 = vst [vmem:[#allocation2] sm:$0x3] %v1466_v27  ;;  %v1377_v28 = vld [vmem:[%s1615_s3 + $0x30] sm:$0xff]   ;;  %v1378_v29 = vld [vmem:[%s1615_s3 + $0x28] sm:$0xff]  }
  0x29   :  { %v87_v19 = vcombine.high %v79_v17, %v79_v17  ;;  %v86_v20 = vrot.slane %v72_v18, %v1518_v35  ;;  %v101_v21 = vpack.c.bf16 %v79_v17, %v79_v17 }
  0x2a   :  { %1169 = vmatpush3.bf16.msra.mxu0 %v1336_v31  ;;  %v1380_v31 = vld [vmem:[%s1615_s3 + $0x18] sm:$0xff]  }
  0x2b   :  { %1191 = vmatpush3.bf16.msra.mxu1 %v1337_v32  ;;  %1170 = vmatprep.subr.bf16.mxu0 %v1338_v33  ;;  %v102_v22 = vpack.c.bf16 %v87_v19, %v87_v19  ;;  %v88_v23 = vcombine.high %v86_v20, %v86_v20  ;;  %v103_v24 = vpack.c.bf16 %v86_v20, %v86_v20  ;;  %v1381_v32 = vld [vmem:[%s1615_s3 + $0x10] sm:$0xff]   ;;  %v1382_v33 = vld [vmem:[%s1615_s3 + $0x8] sm:$0xff]  }
  0x2c   :  { %1192 = vmatprep.subr.bf16.mxu1 %v1339_v34  ;;  %v1383_v34 = vld [vmem:[%s1615_s3] sm:$0xff]  }
  0x2d   :  { %v104_v25 = vpack.c.bf16 %v88_v23, %v88_v23 }
  0x2e   :  { %1171 = vmatpush3.bf16.msra.mxu0 %v1340_v36 }
  0x2f   :  { %1193 = vmatpush3.bf16.msra.mxu1 %v1341_v37  ;;  %1200 = vmatprep.subr.bf16.mxu0 %v1343_v41 }
  0x30   :  { %1222 = vmatprep.subr.bf16.mxu1 %v1344_v42 }
  0x31   :  { %650 = vmatmul.mubr.bf16.vlgmr.msra.gmra.mxu0 %v97_v45 }
  0x32   :  { %1201 = vmatpush3.bf16.msra.mxu0 %v1345_v46  ;;  %690 = vmatmul.mubr.bf16.vlgmr.msra.gmra.mxu1 %v99_v50 }
  0x33   :  { %1202 = vmatprep.subr.bf16.mxu0 %v1347_v51  ;;  %1223 = vmatpush3.bf16.msra.mxu1 %v1346_v49 }
  0x34   :  { %1224 = vmatprep.subr.bf16.mxu1 %v1348_v53  ;;  %729 = vmatprep.mubr.bf16.mxu0 %v102_v22 }
  0x35   :  { %769 = vmatprep.mubr.bf16.mxu1 %v104_v25 }
  0x36   :  { %1203 = vmatpush3.bf16.msra.mxu0 %v1349_v54  ;;  %v50_v54 = vld [vmem:[#allocation2] sm:$0x3] }
  0x37   :  { %1204 = vmatprep.subr.bf16.mxu0 %v1351_v56  ;;  %1225 = vmatpush3.bf16.msra.mxu1 %v1350_v55 }
  0x38   :  { %1226 = vmatprep.subr.bf16.mxu1 %v1352_v57 }
  0x3a   :  { %1205 = vmatpush3.bf16.msra.mxu0 %v1353_v58 }
  0x3b   :  { %1206 = vmatprep.subr.bf16.mxu0 %v1355_v60  ;;  %1227 = vmatpush3.bf16.msra.mxu1 %v1354_v59  ;;  %v1137_v60 = vld [vmem:[%s1614_s2] ss:$0 sm:$0xff] }
  0x3c   :  { %1228 = vmatprep.subr.bf16.mxu1 %v1356_v61 }
  0x3e   :  { %1207 = vmatpush3.bf16.msra.mxu0 %v1357_v62 }
  0x3f   :  { %1208 = vmatprep.subr.bf16.mxu0 %v1359_v0  ;;  %1229 = vmatpush3.bf16.msra.mxu1 %v1358_v63  ;;  %v1384_v0 = vld [vmem:[%s1617_s5 + $0x38] sm:$0xff]  }
  0x40   :  { %1230 = vmatprep.subr.bf16.mxu1 %v1360_v1  ;;  %v1385_v1 = vld [vmem:[%s1617_s5 + $0x30] sm:$0xff]  }
  0x42   :  { %1209 = vmatpush3.bf16.msra.mxu0 %v1361_v2  ;;  %v1386_v2 = vld [vmem:[%s1617_s5 + $0x28] sm:$0xff]  }
  0x43   :  { %1210 = vmatprep.subr.bf16.mxu0 %v1363_v4  ;;  %1231 = vmatpush3.bf16.msra.mxu1 %v1362_v3  ;;  %v1387_v3 = vld [vmem:[%s1617_s5 + $0x20] sm:$0xff]   ;;  %v1388_v4 = vld [vmem:[%s1617_s5 + $0x18] sm:$0xff]  }
  0x44   :  { %1232 = vmatprep.subr.bf16.mxu1 %v1364_v5  ;;  %v1389_v5 = vld [vmem:[%s1617_s5 + $0x10] sm:$0xff]  }
  0x46   :  { %1211 = vmatpush3.bf16.msra.mxu0 %v1365_v6  ;;  %v1390_v6 = vld [vmem:[%s1617_s5 + $0x8] sm:$0xff]  }
  0x47   :  { %1212 = vmatprep.subr.bf16.mxu0 %v1367_v8  ;;  %1233 = vmatpush3.bf16.msra.mxu1 %v1366_v7  ;;  %v1391_v7 = vld [vmem:[%s1617_s5] sm:$0xff]  }
  0x48   :  { %1234 = vmatprep.subr.bf16.mxu1 %v1368_v9  ;;  %v1138_v8 = vld [vmem:[%s1616_s4] ss:$0 sm:$0xff]  ;;  %s1468_s4 = smov [#allocation6]  }
  0x49   :  { %s1050_s5 = sshll.u32 %s1468_s4, 4  ;;  %s1051_s5 = int_to_ptr.vmem [resolvable:$true] %s1050_s5 }
  0x4a   :  { %1213 = vmatpush3.bf16.msra.mxu0 %v1369_v10  ;;  %s1416_s24 = scalar_lea.vmem %s1051_s5, 16  ;;  %s1420_s25 = scalar_lea.vmem %s1051_s5, 32 }
  0x4b   :  { %1214 = vmatprep.subr.bf16.mxu0 %v1371_v12  ;;  %1235 = vmatpush3.bf16.msra.mxu1 %v1370_v11  ;;  %p1417_p5 = scmp.ne.s32.totalorder %s1051_s5, %s1416_s24  ;;  %p1421_p6 = scmp.lt.s32.totalorder %s1051_s5, %s1051_s5 }
  0x4c   :  { %1236 = vmatprep.subr.bf16.mxu1 %v1372_v13  ;;  %p1422_p7 = scmp.lt.s32.totalorder %s1420_s25, %s1416_s24 }
  0x4e   :  { %1215 = vmatpush3.bf16.msra.mxu0 %v1373_v14  ;;  %p1423_p8 = por %p1422_p7, %p1421_p6 }
  0x4f   :  { %1237 = vmatpush3.bf16.msra.mxu1 %v1374_v16  ;;  %1262 = vmatprep.subr.bf16.mxu0 %v1466_v27 }
  0x50   :  { %1282 = vmatprep.subr.bf16.mxu1 %v1466_v27  ;;  %p1424_p9 = pnand %p1423_p8, %p1417_p5 }
  0x51   :  { %730 = vmatmul.mubr.bf16.vlgmr.msra.gmra.mxu0 %v101_v21 }
  0x52   :  { %770 = vmatmul.mubr.bf16.vlgmr.msra.gmra.mxu1 %v103_v24  ;;  %1263 = vmatpush3.bf16.msra.mxu0 %v1376_v26 }
  0x53   :  { %1264 = vmatprep.subr.bf16.mxu0 %v1466_v27  ;;  %1278 = vmatprep.mubr.msk.bf16.mxu0 %vm1467_vm0, %v1466_v27 }
  0x54   :  { %1298 = vmatprep.mubr.msk.bf16.mxu1 %vm1467_vm0, %v1466_v27  ;;  %1283 = vmatpush3.bf16.msra.mxu1 %v1384_v0 }
  0x55   :  { %1284 = vmatprep.subr.bf16.mxu1 %v1466_v27 }
  0x56   :  { %1265 = vmatpush3.bf16.msra.mxu0 %v1377_v28 }
  0x57   :  { %1266 = vmatprep.subr.bf16.mxu0 %v1466_v27 }
  0x58   :  { %1285 = vmatpush3.bf16.msra.mxu1 %v1385_v1 }
  0x59   :  { %1286 = vmatprep.subr.bf16.mxu1 %v1466_v27 }
  0x5a   :  { %1267 = vmatpush3.bf16.msra.mxu0 %v1378_v29 }
  0x5b   :  { %1268 = vmatprep.subr.bf16.mxu0 %v1466_v27 }
  0x5c   :  { %1287 = vmatpush3.bf16.msra.mxu1 %v1386_v2 }
  0x5d   :  { %1288 = vmatprep.subr.bf16.mxu1 %v1466_v27 }
  0x5e   :  { %1269 = vmatpush3.bf16.msra.mxu0 %v1379_v30 }
  0x5f   :  { %1270 = vmatprep.subr.bf16.mxu0 %v1466_v27 }
  0x60   :  { %1289 = vmatpush3.bf16.msra.mxu1 %v1387_v3 }
  0x61   :  { %1290 = vmatprep.subr.bf16.mxu1 %v1466_v27 }
  0x62   :  { %1271 = vmatpush3.bf16.msra.mxu0 %v1380_v31 }
  0x63   :  { %1272 = vmatprep.subr.bf16.mxu0 %v1466_v27 }
  0x64   :  { %1291 = vmatpush3.bf16.msra.mxu1 %v1388_v4 }
  0x65   :  { %1292 = vmatprep.subr.bf16.mxu1 %v1466_v27 }
  0x66   :  { %1273 = vmatpush3.bf16.msra.mxu0 %v1381_v32 }
  0x67   :  { %1274 = vmatprep.subr.bf16.mxu0 %v1466_v27 }
  0x68   :  { %1293 = vmatpush3.bf16.msra.mxu1 %v1389_v5 }
  0x69   :  { %1294 = vmatprep.subr.bf16.mxu1 %v1466_v27 }
  0x6a   :  { %1275 = vmatpush3.bf16.msra.mxu0 %v1382_v33 }
  0x6b   :  { %1276 = vmatprep.subr.bf16.mxu0 %v1466_v27 }
  0x6c   :  { %1295 = vmatpush3.bf16.msra.mxu1 %v1390_v6 }
  0x6d   :  { %1296 = vmatprep.subr.bf16.mxu1 %v1466_v27 }
  0x6e   :  { %1277 = vmatpush3.bf16.msra.mxu0 %v1383_v34 }
  0x70   :  { %1297 = vmatpush3.bf16.msra.mxu1 %v1391_v7 }
  0xf1   :  { %v1172_v35 = vpop.f32.mrf.mxu0 }
  0xf2   :  { %v1194_v36 = vpop.f32.mrf.mxu1 }
  0xf3   :  { %v1173_v37 = vpop.f32.mrf.mxu0 }
  0xf4   :  { %v1195_v38 = vpop.f32.mrf.mxu1  ;;  %v1174_v43 = vadd.f32 %v1173_v37, %v1172_v35 }
  0xf5   :  { %v1175_v39 = vpop.f32.mrf.mxu0  ;;  %v1196_v44 = vadd.f32 %v1195_v38, %v1194_v36 }
  0xf6   :  { %v1197_v40 = vpop.f32.mrf.mxu1 }
  0xf7   :  { %v1176_v41 = vpop.f32.mrf.mxu0  ;;  %v692_v48 = vadd.f32 %v1196_v44, %v1174_v43 }
  0xf8   :  { %v1198_v42 = vpop.f32.mrf.mxu1 }
 0x111   :  { %v1216_v45 = vpop.f32.mrf.mxu0 }
 0x112   :  { %v1238_v46 = vpop.f32.mrf.mxu1 }
 0x113   :  { %v1217_v47 = vpop.f32.mrf.mxu0 }
 0x114   :  { %v1218_v49 = vadd.f32 %v1217_v47, %v1216_v45  ;;  %v1239_v50 = vpop.f32.mrf.mxu1 }
 0x115   :  { %v1219_v51 = vpop.f32.mrf.mxu0  ;;  %v1240_v53 = vadd.f32 %v1239_v50, %v1238_v46 }
 0x116   :  { %v732_v52 = vadd.f32 %v1218_v49, %v692_v48  ;;  %v1241_v55 = vpop.f32.mrf.mxu1 }
 0x117   :  { %v1220_v56 = vpop.f32.mrf.mxu0 }
 0x118   :  { %v772_v57 = vadd.f32 %v1240_v53, %v732_v52  ;;  %v1242_v58 = vpop.f32.mrf.mxu1 }
 0x11a   :  { %v777_v59 = vadd.f32 %v772_v57, %v50_v54 }
 0x11c   :  { %778 = vst [vmem:[#allocation2] sm:$0x3] %v777_v59 }
 0x123   :  { %v782_v61 = vld [vmem:[#allocation2] sm:$0x3] }
 0x124   :  { %v790_v62 = vadd.f32 %v1137_v60, %v782_v61 }
 0x126   :  { %v791_v63 = vpack.c.bf16 %v790_v62, %v790_v62 }
 0x128   :  { %1279 = vmatmul.mubr.bf16.vlgmr.msra.gmra.mxu0 %v791_v63  ;;  %792 = vst [vmem:[#allocation6] sm:$0x1] %v791_v63 }
 0x1e8   :  { %v898_v9 = vpop.f32.mrf.mxu0 }
 0x1e9   :  { %v899_v10 = vadd.f32 %v1138_v8, %v898_v9 }
 0x1ea   :  { %v1280_v11 = vpop.f32.mrf.mxu0 }
 0x1eb   :  { %v905_v12 = vmul.f32 0.70710677, %v899_v10  ;;  %v904_v36 = vmul.f32 0.5, %v899_v10 }
 0x1ec   :  { %v901_v13 = vpop.f32.mrf.mxu0 }
 0x1ed   :  { %v906_v14 = vand.u32 2147483647, %v905_v12  ;;  %vm926_vm1 = vcmp.lt.f32.partialorder %v905_v12, 0.0 }
 0x1ee   :  { %v1281_v15 = vpop.f32.mrf.mxu0 }
 0x1ef   :  { %v907_v16 = vmul.f32 0.3275911, %v906_v14  ;;  %v920_v18 = vmul.f32 %v906_v14, %v906_v14 }
 0x1f1   :  { %v908_v17 = vadd.f32 1.0, %v907_v16  ;;  %v921_v19 = vsub.f32 0.0, %v920_v18 }
 0x1f3   :  { %1392 = vrcp.f32 %v908_v17  ;;  %v922_v22 = vmul.f32 1.442695, %v921_v19 }
 0x1f5   :  { %1394 = vpow2.f32 %v922_v22 }
 0x200   :  { %v1393_v20 = vpop.eup %1392 }
 0x201   :  { %v911_v21 = vmul.f32 1.0614054, %v1393_v20 }
 0x202   :  { %v1395_v31 = vpop.eup %1394 }
 0x203   :  { %v912_v23 = vadd.f32 -1.4531521, %v911_v21 }
 0x205   :  { %v913_v24 = vmul.f32 %v1393_v20, %v912_v23 }
 0x207   :  { %v914_v25 = vadd.f32 1.4214138, %v913_v24 }
 0x209   :  { %v915_v26 = vmul.f32 %v1393_v20, %v914_v25 }
 0x20b   :  { %v916_v27 = vadd.f32 -0.28449672, %v915_v26 }
 0x20d   :  { %v917_v28 = vmul.f32 %v1393_v20, %v916_v27 }
 0x20f   :  { %v918_v29 = vadd.f32 0.2548296, %v917_v28 }
 0x211   :  { %v919_v30 = vmul.f32 %v1393_v20, %v918_v29 }
 0x213   :  { %v924_v32 = vmul.f32 %v1395_v31, %v919_v30 }
 0x215   :  { %v925_v33 = vsub.f32 1.0, %v924_v32 }
 0x217   :  { %v927_v34 = vsub.f32 0.0, %v925_v33 }
 0x219   :  { %v928_v35 = vsel %vm926_vm1, %v927_v34, %v925_v33 }
 0x21a   :  { %v929_v37 = vadd.f32 1.0, %v928_v35 }
 0x21c   :  { %v930_v38 = vmul.f32 %v929_v37, %v904_v36 }
 0x21e   :  { %v931_v39 = vpack.c.bf16 %v930_v38, %v930_v38 }
 0x220   :  { %1299 = vmatmul.mubr.bf16.vlgmr.msra.gmra.mxu1 %v931_v39 }
 0x221   :  { %1427 = shalt.err (!%p1424_p9)
}
 0x222   :  { %1053 = dma.vmem_to_hbm [thread:$0]  %s1051_s5, 16, %s1619_s7, [#allocation5]   ;;  %v1147_v40 = vld [vmem:[%s1618_s6] ss:$0 sm:$0xff] }
 0x223   :  { %s1469_s3 = smov [#allocation7]  }
 0x224   :  { %s1060_s30 = sshll.u32 %s1469_s3, 4  ;;  %s1061_s30 = int_to_ptr.vmem [resolvable:$true] %s1060_s30 }
 0x225   :  { %s1436_s9 = scalar_lea.vmem %s1061_s30, 32  ;;  %p1441_p11 = scmp.lt.s32.totalorder %s1061_s30, %s1061_s30 }
 0x226   :  { %p1437_p10 = scmp.ne.s32.totalorder %s1061_s30, %s1436_s9  ;;  %p1442_p12 = scmp.lt.s32.totalorder %s1436_s9, %s1436_s9 }
 0x228   :  { %p1443_p13 = por %p1442_p12, %p1441_p11 }
 0x22a   :  { %p1444_p0 = pnand %p1443_p13, %p1437_p10 }
 0x2e0   :  { %v1037_v41 = vpop.f32.mrf.mxu1 }
 0x2e1   :  { %v1038_v42 = vadd.f32 %v1147_v40, %v1037_v41 }
 0x2e2   :  { %v1300_v43 = vpop.f32.mrf.mxu1 }
 0x2e3   :  { %1043 = vst [vmem:[#allocation7] sm:$0x3] %v1038_v42 }
 0x2e4   :  { %v1040_v44 = vpop.f32.mrf.mxu1 }
 0x2e5   :  { %1447 = shalt.err (!%p1444_p0)
}
 0x2e6   :  { %1063 = dma.vmem_to_hbm [thread:$0]  %s1061_s30, 32, %s1620_s8, [#allocation8]   ;;  %v1301_v45 = vpop.f32.mrf.mxu1 }
 0x2e7   :  { %1458 = dma.done.wait [#allocation5], 16  }
 0x2e8   :  { %1459 = vsyncadd [#allocation5], 4294967280 }
 0x2e9   :  { %1460 = dma.done.wait [#allocation8], 32  }
 0x2ea   :  { %1461 = vsyncadd [#allocation8], 4294967264 }
 0x2eb   :  { %1070 = vsyncpa [#allocation4], 1 }
 0x2ec   :  { %1071 = vsyncpa [#allocation5], 1 }
 0x2ed   :  { %1072 = vsyncpa [#allocation8], 1 }

</bundles_post_ra>
